<compile_context>
chip_gen: v5e
topology: v5e:2x2
jax: 0.10.0
libtpu: 0.0.40
codegen_flags: <defaults>
</compile_context>

<pallas_src>
import jax
import jax.numpy as jnp
from jax.experimental import pallas as pl
from jax.experimental.pallas import tpu as pltpu


# ----------------------------------------------------------------------------
# Demo-only Pallas kernel (lane-dense identity copy).  NOT called by forward().
# ----------------------------------------------------------------------------
def _copy_kernel(x_ref, o_ref):
    # Pure vld/vst tile copy; no extra VPU work (keeps v5e's single vst slot
    # and HBM bandwidth as the only pressure points on a mem-bound copy).
    o_ref[...] = x_ref[...]


# Single-block threshold: anything <= 4 MiB goes through one gridless block
# (double-buffered in+out = <=16 MiB in flight, safe on every generation).
_SINGLE_BLOCK_BYTES = 4 * 1024 * 1024
# Tiled-path block target: ~2 MiB/block (~85% roofline on v6e measurements);
# 4 in-flight buffers = 8 MiB, under v5e's 16 MiB scoped VMEM and far under
# v7x's 32 MiB scoped / 64 MiB physical VMEM.
_TARGET_BLOCK_BYTES = 2 * 1024 * 1024


def _pallas_identity_inplace(x: jax.Array) -> jax.Array:
    """Identity copy of a 2-D array via pallas_call (demo of DMA plumbing).

    The last dim must be a multiple of 128.  The wrapper widens the lane
    dimension with a free row-major reshape (folding leading rows into the
    last dim) so the kernel sees a lane-dense slab; the result is reshaped
    back to the original shape.

    NOTE: input_output_aliases only reuses the input's HBM buffer for the
    output; the array is still fully read from and written back to HBM
    (2x bytes of traffic).  For a genuinely free identity, return x directly.
    """
    orig_shape = x.shape
    rows, cols = x.shape
    itemsize = jnp.dtype(x.dtype).itemsize

    # Free row-major reshape to widen the lane dimension (lane-dense stores).
    lane_cols = cols
    while lane_cols < 512 and rows % 2 == 0:
        lane_cols *= 2
        rows //= 2
    x2 = x.reshape(rows, lane_cols)

    nbytes = rows * lane_cols * itemsize
    if nbytes <= _SINGLE_BLOCK_BYTES:
        # One block, no grid: zero per-grid-step overhead.
        y2 = pl.pallas_call(
            _copy_kernel,
            out_shape=jax.ShapeDtypeStruct((rows, lane_cols), x2.dtype),
            in_specs=[pl.BlockSpec((rows, lane_cols), lambda: (0, 0))],
            out_specs=pl.BlockSpec((rows, lane_cols), lambda: (0, 0)),
            input_output_aliases={0: 0},
        )(x2)
    else:
        # Tiled path: ~2 MiB lane-dense row blocks, (8,128)-aligned.
        block_rows = max(8, _TARGET_BLOCK_BYTES // (lane_cols * itemsize))
        block_rows = (block_rows // 8) * 8
        block_rows = min(block_rows, rows)
        grid = (pl.cdiv(rows, block_rows),)
        y2 = pl.pallas_call(
            _copy_kernel,
            out_shape=jax.ShapeDtypeStruct((rows, lane_cols), x2.dtype),
            grid=grid,
            in_specs=[pl.BlockSpec((block_rows, lane_cols), lambda i: (i, 0))],
            out_specs=pl.BlockSpec((block_rows, lane_cols), lambda i: (i, 0)),
            input_output_aliases={0: 0},
            compiler_params=pltpu.CompilerParams(
                # Shards sizeable row blocks across v7x's 2 TensorCores;
                # ~no-op on single-TC v5e/v6e.
                dimension_semantics=("parallel",)
            ),
        )(x2)

    return y2.reshape(orig_shape)


# jit with donation so input_output_aliases can reuse the input's HBM buffer
# (this avoids a second allocation, NOT the HBM read+write traffic).
_pallas_identity_jit = jax.jit(_pallas_identity_inplace, donate_argnums=(0,))


# ----------------------------------------------------------------------------
# SumSumNet forward — exact semantic reproduction of the PyTorch module.
# Launches zero kernels (fastest correct implementation of an empty forward).
# ----------------------------------------------------------------------------
class SumSumNet:
    """JAX/Pallas port of the (empty) PyTorch SumSumNet module."""

    def __init__(self):
        # Reference __init__ declares no parameters.
        pass

    def forward(self):
        # Reference forward body is `pass` -> returns None, no computation,
        # no pallas_call.
        return None

    def __call__(self):
        return self.forward()


if __name__ == "__main__":
    # Exact-semantics check: forward() takes no inputs and returns None.
    net = SumSumNet()
    result = net()
    assert result is None, "SumSumNet.forward must return None (body is `pass`)"

    # Demo-only Pallas exercise: single-block, lane-dense identity on a small
    # deterministic input.  (1024,128) f32 is reshaped to (256,512) inside the
    # wrapper and copied in one gridless block.
    key = jax.random.PRNGKey(0)
    x = jax.random.normal(key, (1024, 128), dtype=jnp.float32)
    x_ref_host = jax.device_get(x)       # keep a host copy; x is donated below

    y = _pallas_identity_jit(x)
    jax.block_until_ready(y)
    assert y.shape == (1024, 128)
    assert jnp.array_equal(y, jnp.asarray(x_ref_host)), "identity kernel mismatch"

    print("KERNEL_OK")
</pallas_src>

<mosaic_0001>
module attributes {stable_mosaic.version = 11 : i64} {
  func.func @_copy_kernel(%arg0: memref<256x512xf32, #tpu.memory_space<vmem>>, %arg1: memref<256x512xf32, #tpu.memory_space<vmem>>) attributes {dimension_semantics = [], scalar_prefetch = 0 : i64, scratch_operands = 0 : i64, tpu.core_type = #tpu.core_type<tc>} {
    %c0 = arith.constant 0 : index
    %c0_0 = arith.constant 0 : index
    %0 = vector.load %arg0[%c0, %c0_0] : memref<256x512xf32, #tpu.memory_space<vmem>>, vector<256x512xf32>
    %c0_1 = arith.constant 0 : index
    %c0_2 = arith.constant 0 : index
    %1 = vector.load %arg1[%c0_1, %c0_2] : memref<256x512xf32, #tpu.memory_space<vmem>>, vector<256x512xf32>
    tpu.vector_store %arg1[%c0_1, %c0_2], %0 {strides = array<i32>} : memref<256x512xf32, #tpu.memory_space<vmem>>, vector<256x512xf32>,
    return
  }
}

</mosaic_0001>

<bundles_post_ra>
// kernel: _pallas_identity_inplace.1
= control target key start
LH: loop header
LB: loop body
LE: loop exit
PB: predicated region body
PF: predicated region fallthrough
CT: control target
= control target key end

     0   :  { %s1046_s0 = inlined_call_operand.vmem [shape: f32[256,512], index: 0, kind: input, shape index: {}, may-alias: {0,1}]   ;;  %s1047_s1 = inlined_call_operand.vmem [shape: f32[256,512], index: 1, kind: output, shape index: {}, may-alias: {0,1}]  }
   0x1   :  { %v8_v0 = vld [vmem:[%s1046_s0] sm:$0xff]  ;;  %v9_v1 = vld [vmem:[%s1046_s0 + $0x8] sm:$0xff]  ;;  %v10_v2 = vld [vmem:[%s1046_s0 + $0x10] sm:$0xff] }
   0x2   :  { %136 = vst [vmem:[%s1047_s1] sm:$0xff] %v8_v0 }
   0x9   :  { %v11_v3 = vld [vmem:[%s1046_s0 + $0x18] sm:$0xff] }
   0xa   :  { %137 = vst [vmem:[%s1047_s1 + $0x8] sm:$0xff] %v9_v1 }
  0x11   :  { %v12_v4 = vld [vmem:[%s1046_s0 + $0x20] sm:$0xff] }
  0x12   :  { %138 = vst [vmem:[%s1047_s1 + $0x10] sm:$0xff] %v10_v2 }
  0x19   :  { %v13_v5 = vld [vmem:[%s1046_s0 + $0x28] sm:$0xff] }
  0x1a   :  { %139 = vst [vmem:[%s1047_s1 + $0x18] sm:$0xff] %v11_v3 }
  0x21   :  { %v14_v6 = vld [vmem:[%s1046_s0 + $0x30] sm:$0xff] }
  0x22   :  { %140 = vst [vmem:[%s1047_s1 + $0x20] sm:$0xff] %v12_v4 }
  0x29   :  { %v15_v7 = vld [vmem:[%s1046_s0 + $0x38] sm:$0xff] }
  0x2a   :  { %141 = vst [vmem:[%s1047_s1 + $0x28] sm:$0xff] %v13_v5 }
  0x31   :  { %v16_v8 = vld [vmem:[%s1046_s0 + $0x40] sm:$0xff] }
  0x32   :  { %142 = vst [vmem:[%s1047_s1 + $0x30] sm:$0xff] %v14_v6 }
  0x39   :  { %v17_v9 = vld [vmem:[%s1046_s0 + $0x48] sm:$0xff] }
  0x3a   :  { %143 = vst [vmem:[%s1047_s1 + $0x38] sm:$0xff] %v15_v7 }
  0x41   :  { %v18_v10 = vld [vmem:[%s1046_s0 + $0x50] sm:$0xff] }
  0x42   :  { %144 = vst [vmem:[%s1047_s1 + $0x40] sm:$0xff] %v16_v8 }
  0x49   :  { %v19_v11 = vld [vmem:[%s1046_s0 + $0x58] sm:$0xff] }
  0x4a   :  { %145 = vst [vmem:[%s1047_s1 + $0x48] sm:$0xff] %v17_v9 }
  0x51   :  { %v20_v12 = vld [vmem:[%s1046_s0 + $0x60] sm:$0xff] }
  0x52   :  { %146 = vst [vmem:[%s1047_s1 + $0x50] sm:$0xff] %v18_v10 }
  0x59   :  { %v21_v13 = vld [vmem:[%s1046_s0 + $0x68] sm:$0xff] }
  0x5a   :  { %147 = vst [vmem:[%s1047_s1 + $0x58] sm:$0xff] %v19_v11 }
  0x61   :  { %v22_v14 = vld [vmem:[%s1046_s0 + $0x70] sm:$0xff] }
  0x62   :  { %148 = vst [vmem:[%s1047_s1 + $0x60] sm:$0xff] %v20_v12 }
  0x69   :  { %v23_v15 = vld [vmem:[%s1046_s0 + $0x78] sm:$0xff] }
  0x6a   :  { %149 = vst [vmem:[%s1047_s1 + $0x68] sm:$0xff] %v21_v13 }
  0x71   :  { %v24_v16 = vld [vmem:[%s1046_s0 + $0x80] sm:$0xff] }
  0x72   :  { %150 = vst [vmem:[%s1047_s1 + $0x70] sm:$0xff] %v22_v14 }
  0x79   :  { %v25_v17 = vld [vmem:[%s1046_s0 + $0x88] sm:$0xff] }
  0x7a   :  { %151 = vst [vmem:[%s1047_s1 + $0x78] sm:$0xff] %v23_v15 }
  0x81   :  { %v26_v18 = vld [vmem:[%s1046_s0 + $0x90] sm:$0xff] }
  0x82   :  { %152 = vst [vmem:[%s1047_s1 + $0x80] sm:$0xff] %v24_v16 }
  0x89   :  { %v27_v19 = vld [vmem:[%s1046_s0 + $0x98] sm:$0xff] }
  0x8a   :  { %153 = vst [vmem:[%s1047_s1 + $0x88] sm:$0xff] %v25_v17 }
  0x91   :  { %v28_v20 = vld [vmem:[%s1046_s0 + $0xa0] sm:$0xff] }
  0x92   :  { %154 = vst [vmem:[%s1047_s1 + $0x90] sm:$0xff] %v26_v18 }
  0x99   :  { %v29_v21 = vld [vmem:[%s1046_s0 + $0xa8] sm:$0xff] }
  0x9a   :  { %155 = vst [vmem:[%s1047_s1 + $0x98] sm:$0xff] %v27_v19 }
  0xa1   :  { %v30_v22 = vld [vmem:[%s1046_s0 + $0xb0] sm:$0xff] }
  0xa2   :  { %156 = vst [vmem:[%s1047_s1 + $0xa0] sm:$0xff] %v28_v20 }
  0xa9   :  { %v31_v23 = vld [vmem:[%s1046_s0 + $0xb8] sm:$0xff] }
  0xaa   :  { %157 = vst [vmem:[%s1047_s1 + $0xa8] sm:$0xff] %v29_v21 }
  0xb1   :  { %v32_v24 = vld [vmem:[%s1046_s0 + $0xc0] sm:$0xff] }
  0xb2   :  { %158 = vst [vmem:[%s1047_s1 + $0xb0] sm:$0xff] %v30_v22 }
  0xb9   :  { %v33_v25 = vld [vmem:[%s1046_s0 + $0xc8] sm:$0xff] }
  0xba   :  { %159 = vst [vmem:[%s1047_s1 + $0xb8] sm:$0xff] %v31_v23 }
  0xc1   :  { %v34_v26 = vld [vmem:[%s1046_s0 + $0xd0] sm:$0xff] }
  0xc2   :  { %160 = vst [vmem:[%s1047_s1 + $0xc0] sm:$0xff] %v32_v24 }
  0xc9   :  { %v35_v27 = vld [vmem:[%s1046_s0 + $0xd8] sm:$0xff] }
  0xca   :  { %161 = vst [vmem:[%s1047_s1 + $0xc8] sm:$0xff] %v33_v25 }
  0xd1   :  { %v36_v28 = vld [vmem:[%s1046_s0 + $0xe0] sm:$0xff] }
  0xd2   :  { %162 = vst [vmem:[%s1047_s1 + $0xd0] sm:$0xff] %v34_v26 }
  0xd9   :  { %v37_v29 = vld [vmem:[%s1046_s0 + $0xe8] sm:$0xff] }
  0xda   :  { %163 = vst [vmem:[%s1047_s1 + $0xd8] sm:$0xff] %v35_v27 }
  0xe1   :  { %v38_v30 = vld [vmem:[%s1046_s0 + $0xf0] sm:$0xff] }
  0xe2   :  { %164 = vst [vmem:[%s1047_s1 + $0xe0] sm:$0xff] %v36_v28 }
  0xe9   :  { %v39_v31 = vld [vmem:[%s1046_s0 + $0xf8] sm:$0xff] }
  0xea   :  { %165 = vst [vmem:[%s1047_s1 + $0xe8] sm:$0xff] %v37_v29 }
  0xf1   :  { %v40_v32 = vld [vmem:[%s1046_s0 + $0x100] sm:$0xff] }
  0xf2   :  { %166 = vst [vmem:[%s1047_s1 + $0xf0] sm:$0xff] %v38_v30 }
  0xf9   :  { %v41_v33 = vld [vmem:[%s1046_s0 + $0x108] sm:$0xff] }
  0xfa   :  { %167 = vst [vmem:[%s1047_s1 + $0xf8] sm:$0xff] %v39_v31 }
 0x101   :  { %v42_v34 = vld [vmem:[%s1046_s0 + $0x110] sm:$0xff] }
 0x102   :  { %168 = vst [vmem:[%s1047_s1 + $0x100] sm:$0xff] %v40_v32 }
 0x109   :  { %v43_v35 = vld [vmem:[%s1046_s0 + $0x118] sm:$0xff] }
 0x10a   :  { %169 = vst [vmem:[%s1047_s1 + $0x108] sm:$0xff] %v41_v33 }
 0x111   :  { %v44_v36 = vld [vmem:[%s1046_s0 + $0x120] sm:$0xff] }
 0x112   :  { %170 = vst [vmem:[%s1047_s1 + $0x110] sm:$0xff] %v42_v34 }
 0x119   :  { %v45_v37 = vld [vmem:[%s1046_s0 + $0x128] sm:$0xff] }
 0x11a   :  { %171 = vst [vmem:[%s1047_s1 + $0x118] sm:$0xff] %v43_v35 }
 0x121   :  { %v46_v38 = vld [vmem:[%s1046_s0 + $0x130] sm:$0xff] }
 0x122   :  { %172 = vst [vmem:[%s1047_s1 + $0x120] sm:$0xff] %v44_v36 }
 0x129   :  { %v47_v39 = vld [vmem:[%s1046_s0 + $0x138] sm:$0xff] }
 0x12a   :  { %173 = vst [vmem:[%s1047_s1 + $0x128] sm:$0xff] %v45_v37 }
 0x131   :  { %v48_v40 = vld [vmem:[%s1046_s0 + $0x140] sm:$0xff] }
 0x132   :  { %174 = vst [vmem:[%s1047_s1 + $0x130] sm:$0xff] %v46_v38 }
 0x139   :  { %v49_v41 = vld [vmem:[%s1046_s0 + $0x148] sm:$0xff] }
 0x13a   :  { %175 = vst [vmem:[%s1047_s1 + $0x138] sm:$0xff] %v47_v39 }
 0x141   :  { %v50_v42 = vld [vmem:[%s1046_s0 + $0x150] sm:$0xff] }
 0x142   :  { %176 = vst [vmem:[%s1047_s1 + $0x140] sm:$0xff] %v48_v40 }
 0x149   :  { %v51_v43 = vld [vmem:[%s1046_s0 + $0x158] sm:$0xff] }
 0x14a   :  { %177 = vst [vmem:[%s1047_s1 + $0x148] sm:$0xff] %v49_v41 }
 0x151   :  { %v52_v44 = vld [vmem:[%s1046_s0 + $0x160] sm:$0xff] }
 0x152   :  { %178 = vst [vmem:[%s1047_s1 + $0x150] sm:$0xff] %v50_v42 }
 0x159   :  { %v53_v45 = vld [vmem:[%s1046_s0 + $0x168] sm:$0xff] }
 0x15a   :  { %179 = vst [vmem:[%s1047_s1 + $0x158] sm:$0xff] %v51_v43 }
 0x161   :  { %v54_v46 = vld [vmem:[%s1046_s0 + $0x170] sm:$0xff] }
 0x162   :  { %180 = vst [vmem:[%s1047_s1 + $0x160] sm:$0xff] %v52_v44 }
 0x169   :  { %v55_v47 = vld [vmem:[%s1046_s0 + $0x178] sm:$0xff] }
 0x16a   :  { %181 = vst [vmem:[%s1047_s1 + $0x168] sm:$0xff] %v53_v45 }
 0x171   :  { %v56_v48 = vld [vmem:[%s1046_s0 + $0x180] sm:$0xff] }
 0x172   :  { %182 = vst [vmem:[%s1047_s1 + $0x170] sm:$0xff] %v54_v46 }
 0x179   :  { %v57_v49 = vld [vmem:[%s1046_s0 + $0x188] sm:$0xff] }
 0x17a   :  { %183 = vst [vmem:[%s1047_s1 + $0x178] sm:$0xff] %v55_v47 }
 0x181   :  { %v58_v50 = vld [vmem:[%s1046_s0 + $0x190] sm:$0xff] }
 0x182   :  { %184 = vst [vmem:[%s1047_s1 + $0x180] sm:$0xff] %v56_v48 }
 0x189   :  { %v59_v51 = vld [vmem:[%s1046_s0 + $0x198] sm:$0xff] }
 0x18a   :  { %185 = vst [vmem:[%s1047_s1 + $0x188] sm:$0xff] %v57_v49 }
 0x191   :  { %v60_v52 = vld [vmem:[%s1046_s0 + $0x1a0] sm:$0xff] }
 0x192   :  { %186 = vst [vmem:[%s1047_s1 + $0x190] sm:$0xff] %v58_v50 }
 0x199   :  { %v61_v53 = vld [vmem:[%s1046_s0 + $0x1a8] sm:$0xff] }
 0x19a   :  { %187 = vst [vmem:[%s1047_s1 + $0x198] sm:$0xff] %v59_v51 }
 0x1a1   :  { %v62_v54 = vld [vmem:[%s1046_s0 + $0x1b0] sm:$0xff] }
 0x1a2   :  { %188 = vst [vmem:[%s1047_s1 + $0x1a0] sm:$0xff] %v60_v52 }
 0x1a9   :  { %v63_v55 = vld [vmem:[%s1046_s0 + $0x1b8] sm:$0xff] }
 0x1aa   :  { %189 = vst [vmem:[%s1047_s1 + $0x1a8] sm:$0xff] %v61_v53 }
 0x1b1   :  { %v64_v56 = vld [vmem:[%s1046_s0 + $0x1c0] sm:$0xff] }
 0x1b2   :  { %190 = vst [vmem:[%s1047_s1 + $0x1b0] sm:$0xff] %v62_v54 }
 0x1b9   :  { %v65_v57 = vld [vmem:[%s1046_s0 + $0x1c8] sm:$0xff] }
 0x1ba   :  { %191 = vst [vmem:[%s1047_s1 + $0x1b8] sm:$0xff] %v63_v55 }
 0x1c1   :  { %v66_v58 = vld [vmem:[%s1046_s0 + $0x1d0] sm:$0xff] }
 0x1c2   :  { %192 = vst [vmem:[%s1047_s1 + $0x1c0] sm:$0xff] %v64_v56 }
 0x1c9   :  { %v67_v59 = vld [vmem:[%s1046_s0 + $0x1d8] sm:$0xff] }
 0x1ca   :  { %193 = vst [vmem:[%s1047_s1 + $0x1c8] sm:$0xff] %v65_v57 }
 0x1d1   :  { %v68_v60 = vld [vmem:[%s1046_s0 + $0x1e0] sm:$0xff] }
 0x1d2   :  { %194 = vst [vmem:[%s1047_s1 + $0x1d0] sm:$0xff] %v66_v58 }
 0x1d9   :  { %v69_v61 = vld [vmem:[%s1046_s0 + $0x1e8] sm:$0xff] }
 0x1da   :  { %195 = vst [vmem:[%s1047_s1 + $0x1d8] sm:$0xff] %v67_v59 }
 0x1e1   :  { %v70_v62 = vld [vmem:[%s1046_s0 + $0x1f0] sm:$0xff] }
 0x1e2   :  { %196 = vst [vmem:[%s1047_s1 + $0x1e0] sm:$0xff] %v68_v60 }
 0x1e9   :  { %v71_v63 = vld [vmem:[%s1046_s0 + $0x1f8] sm:$0xff] }
 0x1ea   :  { %197 = vst [vmem:[%s1047_s1 + $0x1e8] sm:$0xff] %v69_v61 }
 0x1f1   :  { %v72_v0 = vld [vmem:[%s1046_s0 + $0x200] sm:$0xff] }
 0x1f2   :  { %198 = vst [vmem:[%s1047_s1 + $0x1f0] sm:$0xff] %v70_v62 }
 0x1f9   :  { %v73_v1 = vld [vmem:[%s1046_s0 + $0x208] sm:$0xff] }
 0x1fa   :  { %199 = vst [vmem:[%s1047_s1 + $0x1f8] sm:$0xff] %v71_v63 }
 0x201   :  { %v74_v2 = vld [vmem:[%s1046_s0 + $0x210] sm:$0xff] }
 0x202   :  { %200 = vst [vmem:[%s1047_s1 + $0x200] sm:$0xff] %v72_v0 }
 0x209   :  { %v75_v3 = vld [vmem:[%s1046_s0 + $0x218] sm:$0xff] }
 0x20a   :  { %201 = vst [vmem:[%s1047_s1 + $0x208] sm:$0xff] %v73_v1 }
 0x211   :  { %v76_v4 = vld [vmem:[%s1046_s0 + $0x220] sm:$0xff] }
 0x212   :  { %202 = vst [vmem:[%s1047_s1 + $0x210] sm:$0xff] %v74_v2 }
 0x219   :  { %v77_v5 = vld [vmem:[%s1046_s0 + $0x228] sm:$0xff] }
 0x21a   :  { %203 = vst [vmem:[%s1047_s1 + $0x218] sm:$0xff] %v75_v3 }
 0x221   :  { %v78_v6 = vld [vmem:[%s1046_s0 + $0x230] sm:$0xff] }
 0x222   :  { %204 = vst [vmem:[%s1047_s1 + $0x220] sm:$0xff] %v76_v4 }
 0x229   :  { %v79_v7 = vld [vmem:[%s1046_s0 + $0x238] sm:$0xff] }
 0x22a   :  { %205 = vst [vmem:[%s1047_s1 + $0x228] sm:$0xff] %v77_v5 }
 0x231   :  { %v80_v8 = vld [vmem:[%s1046_s0 + $0x240] sm:$0xff] }
 0x232   :  { %206 = vst [vmem:[%s1047_s1 + $0x230] sm:$0xff] %v78_v6 }
 0x239   :  { %v81_v9 = vld [vmem:[%s1046_s0 + $0x248] sm:$0xff] }
 0x23a   :  { %207 = vst [vmem:[%s1047_s1 + $0x238] sm:$0xff] %v79_v7 }
 0x241   :  { %v82_v10 = vld [vmem:[%s1046_s0 + $0x250] sm:$0xff] }
 0x242   :  { %208 = vst [vmem:[%s1047_s1 + $0x240] sm:$0xff] %v80_v8 }
 0x249   :  { %v83_v11 = vld [vmem:[%s1046_s0 + $0x258] sm:$0xff] }
 0x24a   :  { %209 = vst [vmem:[%s1047_s1 + $0x248] sm:$0xff] %v81_v9 }
 0x251   :  { %v84_v12 = vld [vmem:[%s1046_s0 + $0x260] sm:$0xff] }
 0x252   :  { %210 = vst [vmem:[%s1047_s1 + $0x250] sm:$0xff] %v82_v10 }
 0x259   :  { %v85_v13 = vld [vmem:[%s1046_s0 + $0x268] sm:$0xff] }
 0x25a   :  { %211 = vst [vmem:[%s1047_s1 + $0x258] sm:$0xff] %v83_v11 }
 0x261   :  { %v86_v14 = vld [vmem:[%s1046_s0 + $0x270] sm:$0xff] }
 0x262   :  { %212 = vst [vmem:[%s1047_s1 + $0x260] sm:$0xff] %v84_v12 }
 0x269   :  { %v87_v15 = vld [vmem:[%s1046_s0 + $0x278] sm:$0xff] }
 0x26a   :  { %213 = vst [vmem:[%s1047_s1 + $0x268] sm:$0xff] %v85_v13 }
 0x271   :  { %v88_v16 = vld [vmem:[%s1046_s0 + $0x280] sm:$0xff] }
 0x272   :  { %214 = vst [vmem:[%s1047_s1 + $0x270] sm:$0xff] %v86_v14 }
 0x279   :  { %v89_v17 = vld [vmem:[%s1046_s0 + $0x288] sm:$0xff] }
 0x27a   :  { %215 = vst [vmem:[%s1047_s1 + $0x278] sm:$0xff] %v87_v15 }
 0x281   :  { %v90_v18 = vld [vmem:[%s1046_s0 + $0x290] sm:$0xff] }
 0x282   :  { %216 = vst [vmem:[%s1047_s1 + $0x280] sm:$0xff] %v88_v16 }
 0x289   :  { %v91_v19 = vld [vmem:[%s1046_s0 + $0x298] sm:$0xff] }
 0x28a   :  { %217 = vst [vmem:[%s1047_s1 + $0x288] sm:$0xff] %v89_v17 }
 0x291   :  { %v92_v20 = vld [vmem:[%s1046_s0 + $0x2a0] sm:$0xff] }
 0x292   :  { %218 = vst [vmem:[%s1047_s1 + $0x290] sm:$0xff] %v90_v18 }
 0x299   :  { %v93_v21 = vld [vmem:[%s1046_s0 + $0x2a8] sm:$0xff] }
 0x29a   :  { %219 = vst [vmem:[%s1047_s1 + $0x298] sm:$0xff] %v91_v19 }
 0x2a1   :  { %v94_v22 = vld [vmem:[%s1046_s0 + $0x2b0] sm:$0xff] }
 0x2a2   :  { %220 = vst [vmem:[%s1047_s1 + $0x2a0] sm:$0xff] %v92_v20 }
 0x2a9   :  { %v95_v23 = vld [vmem:[%s1046_s0 + $0x2b8] sm:$0xff] }
 0x2aa   :  { %221 = vst [vmem:[%s1047_s1 + $0x2a8] sm:$0xff] %v93_v21 }
 0x2b1   :  { %v96_v24 = vld [vmem:[%s1046_s0 + $0x2c0] sm:$0xff] }
 0x2b2   :  { %222 = vst [vmem:[%s1047_s1 + $0x2b0] sm:$0xff] %v94_v22 }
 0x2b9   :  { %v97_v25 = vld [vmem:[%s1046_s0 + $0x2c8] sm:$0xff] }
 0x2ba   :  { %223 = vst [vmem:[%s1047_s1 + $0x2b8] sm:$0xff] %v95_v23 }
 0x2c1   :  { %v98_v26 = vld [vmem:[%s1046_s0 + $0x2d0] sm:$0xff] }
 0x2c2   :  { %224 = vst [vmem:[%s1047_s1 + $0x2c0] sm:$0xff] %v96_v24 }
 0x2c9   :  { %v99_v27 = vld [vmem:[%s1046_s0 + $0x2d8] sm:$0xff] }
 0x2ca   :  { %225 = vst [vmem:[%s1047_s1 + $0x2c8] sm:$0xff] %v97_v25 }
 0x2d1   :  { %v100_v28 = vld [vmem:[%s1046_s0 + $0x2e0] sm:$0xff] }
 0x2d2   :  { %226 = vst [vmem:[%s1047_s1 + $0x2d0] sm:$0xff] %v98_v26 }
 0x2d9   :  { %v101_v29 = vld [vmem:[%s1046_s0 + $0x2e8] sm:$0xff] }
 0x2da   :  { %227 = vst [vmem:[%s1047_s1 + $0x2d8] sm:$0xff] %v99_v27 }
 0x2e1   :  { %v102_v30 = vld [vmem:[%s1046_s0 + $0x2f0] sm:$0xff] }
 0x2e2   :  { %228 = vst [vmem:[%s1047_s1 + $0x2e0] sm:$0xff] %v100_v28 }
 0x2e9   :  { %v103_v31 = vld [vmem:[%s1046_s0 + $0x2f8] sm:$0xff] }
 0x2ea   :  { %229 = vst [vmem:[%s1047_s1 + $0x2e8] sm:$0xff] %v101_v29 }
 0x2f1   :  { %v104_v32 = vld [vmem:[%s1046_s0 + $0x300] sm:$0xff] }
 0x2f2   :  { %230 = vst [vmem:[%s1047_s1 + $0x2f0] sm:$0xff] %v102_v30 }
 0x2f9   :  { %v105_v33 = vld [vmem:[%s1046_s0 + $0x308] sm:$0xff] }
 0x2fa   :  { %231 = vst [vmem:[%s1047_s1 + $0x2f8] sm:$0xff] %v103_v31 }
 0x301   :  { %v106_v34 = vld [vmem:[%s1046_s0 + $0x310] sm:$0xff] }
 0x302   :  { %232 = vst [vmem:[%s1047_s1 + $0x300] sm:$0xff] %v104_v32 }
 0x309   :  { %v107_v35 = vld [vmem:[%s1046_s0 + $0x318] sm:$0xff] }
 0x30a   :  { %233 = vst [vmem:[%s1047_s1 + $0x308] sm:$0xff] %v105_v33 }
 0x311   :  { %v108_v36 = vld [vmem:[%s1046_s0 + $0x320] sm:$0xff] }
 0x312   :  { %234 = vst [vmem:[%s1047_s1 + $0x310] sm:$0xff] %v106_v34 }
 0x319   :  { %v109_v37 = vld [vmem:[%s1046_s0 + $0x328] sm:$0xff] }
 0x31a   :  { %235 = vst [vmem:[%s1047_s1 + $0x318] sm:$0xff] %v107_v35 }
 0x321   :  { %v110_v38 = vld [vmem:[%s1046_s0 + $0x330] sm:$0xff] }
 0x322   :  { %236 = vst [vmem:[%s1047_s1 + $0x320] sm:$0xff] %v108_v36 }
 0x329   :  { %v111_v39 = vld [vmem:[%s1046_s0 + $0x338] sm:$0xff] }
 0x32a   :  { %237 = vst [vmem:[%s1047_s1 + $0x328] sm:$0xff] %v109_v37 }
 0x331   :  { %v112_v40 = vld [vmem:[%s1046_s0 + $0x340] sm:$0xff] }
 0x332   :  { %238 = vst [vmem:[%s1047_s1 + $0x330] sm:$0xff] %v110_v38 }
 0x339   :  { %v113_v41 = vld [vmem:[%s1046_s0 + $0x348] sm:$0xff] }
 0x33a   :  { %239 = vst [vmem:[%s1047_s1 + $0x338] sm:$0xff] %v111_v39 }
 0x341   :  { %v114_v42 = vld [vmem:[%s1046_s0 + $0x350] sm:$0xff] }
 0x342   :  { %240 = vst [vmem:[%s1047_s1 + $0x340] sm:$0xff] %v112_v40 }
 0x349   :  { %v115_v43 = vld [vmem:[%s1046_s0 + $0x358] sm:$0xff] }
 0x34a   :  { %241 = vst [vmem:[%s1047_s1 + $0x348] sm:$0xff] %v113_v41 }
 0x351   :  { %v116_v44 = vld [vmem:[%s1046_s0 + $0x360] sm:$0xff] }
 0x352   :  { %242 = vst [vmem:[%s1047_s1 + $0x350] sm:$0xff] %v114_v42 }
 0x359   :  { %v117_v45 = vld [vmem:[%s1046_s0 + $0x368] sm:$0xff] }
 0x35a   :  { %243 = vst [vmem:[%s1047_s1 + $0x358] sm:$0xff] %v115_v43 }
 0x361   :  { %v118_v46 = vld [vmem:[%s1046_s0 + $0x370] sm:$0xff] }
 0x362   :  { %244 = vst [vmem:[%s1047_s1 + $0x360] sm:$0xff] %v116_v44 }
 0x369   :  { %v119_v47 = vld [vmem:[%s1046_s0 + $0x378] sm:$0xff] }
 0x36a   :  { %245 = vst [vmem:[%s1047_s1 + $0x368] sm:$0xff] %v117_v45 }
 0x371   :  { %v120_v48 = vld [vmem:[%s1046_s0 + $0x380] sm:$0xff] }
 0x372   :  { %246 = vst [vmem:[%s1047_s1 + $0x370] sm:$0xff] %v118_v46 }
 0x379   :  { %v121_v49 = vld [vmem:[%s1046_s0 + $0x388] sm:$0xff] }
 0x37a   :  { %247 = vst [vmem:[%s1047_s1 + $0x378] sm:$0xff] %v119_v47 }
 0x381   :  { %v122_v50 = vld [vmem:[%s1046_s0 + $0x390] sm:$0xff] }
 0x382   :  { %248 = vst [vmem:[%s1047_s1 + $0x380] sm:$0xff] %v120_v48 }
 0x389   :  { %v123_v51 = vld [vmem:[%s1046_s0 + $0x398] sm:$0xff] }
 0x38a   :  { %249 = vst [vmem:[%s1047_s1 + $0x388] sm:$0xff] %v121_v49 }
 0x391   :  { %v124_v52 = vld [vmem:[%s1046_s0 + $0x3a0] sm:$0xff] }
 0x392   :  { %250 = vst [vmem:[%s1047_s1 + $0x390] sm:$0xff] %v122_v50 }
 0x399   :  { %v125_v53 = vld [vmem:[%s1046_s0 + $0x3a8] sm:$0xff] }
 0x39a   :  { %251 = vst [vmem:[%s1047_s1 + $0x398] sm:$0xff] %v123_v51 }
 0x3a1   :  { %v126_v54 = vld [vmem:[%s1046_s0 + $0x3b0] sm:$0xff] }
 0x3a2   :  { %252 = vst [vmem:[%s1047_s1 + $0x3a0] sm:$0xff] %v124_v52 }
 0x3a9   :  { %v127_v55 = vld [vmem:[%s1046_s0 + $0x3b8] sm:$0xff] }
 0x3aa   :  { %253 = vst [vmem:[%s1047_s1 + $0x3a8] sm:$0xff] %v125_v53 }
 0x3b1   :  { %v128_v56 = vld [vmem:[%s1046_s0 + $0x3c0] sm:$0xff] }
 0x3b2   :  { %254 = vst [vmem:[%s1047_s1 + $0x3b0] sm:$0xff] %v126_v54 }
 0x3b9   :  { %v129_v57 = vld [vmem:[%s1046_s0 + $0x3c8] sm:$0xff] }
 0x3ba   :  { %255 = vst [vmem:[%s1047_s1 + $0x3b8] sm:$0xff] %v127_v55 }
 0x3c1   :  { %v130_v58 = vld [vmem:[%s1046_s0 + $0x3d0] sm:$0xff] }
 0x3c2   :  { %256 = vst [vmem:[%s1047_s1 + $0x3c0] sm:$0xff] %v128_v56 }
 0x3c9   :  { %v131_v59 = vld [vmem:[%s1046_s0 + $0x3d8] sm:$0xff] }
 0x3ca   :  { %257 = vst [vmem:[%s1047_s1 + $0x3c8] sm:$0xff] %v129_v57 }
 0x3d1   :  { %v132_v60 = vld [vmem:[%s1046_s0 + $0x3e0] sm:$0xff] }
 0x3d2   :  { %258 = vst [vmem:[%s1047_s1 + $0x3d0] sm:$0xff] %v130_v58 }
 0x3d9   :  { %v133_v61 = vld [vmem:[%s1046_s0 + $0x3e8] sm:$0xff] }
 0x3da   :  { %259 = vst [vmem:[%s1047_s1 + $0x3d8] sm:$0xff] %v131_v59 }
 0x3e1   :  { %v134_v62 = vld [vmem:[%s1046_s0 + $0x3f0] sm:$0xff] }
 0x3e2   :  { %260 = vst [vmem:[%s1047_s1 + $0x3e0] sm:$0xff] %v132_v60 }
 0x3e9   :  { %v135_v63 = vld [vmem:[%s1046_s0 + $0x3f8] sm:$0xff] }
 0x3ea   :  { %261 = vst [vmem:[%s1047_s1 + $0x3e8] sm:$0xff] %v133_v61 }
 0x3eb   :  { %262 = vst [vmem:[%s1047_s1 + $0x3f0] sm:$0xff] %v134_v62 }
 0x3ec   :  { %263 = vst [vmem:[%s1047_s1 + $0x3f8] sm:$0xff] %v135_v63 }

</bundles_post_ra>
